<compile_context>
chip_gen: v5e
topology: v5e:2x2
jax: 0.10.0
libtpu: 0.0.40
codegen_flags: <defaults>
</compile_context>

<pallas_src>
import functools

import numpy as np
import jax
import jax.numpy as jnp
from jax import lax
from jax.experimental import pallas as pl
from jax.experimental.pallas import tpu as pltpu

_LANE = 128


def _distance_kernel(tri_ref, pos_ref, post_ref, bcol_ref, brow_ref,
                     w_ref, cnt_ref, *,
                     tile_i, tile_j, chunk, cutoff_lower, cutoff_upper,
                     max_num_neighbors, loop):
    i = pl.program_id(0)
    j = pl.program_id(1)

    # Per-row running candidate count, carried across the column (j) grid axis.
    # NOTE: this carry requires j to be the innermost, sequentially-iterated
    # ("arbitrary") grid axis; do not reorder the grid or mark j "parallel".
    @pl.when(j == 0)
    def _():
        cnt_ref[...] = jnp.zeros_like(cnt_ref)

    pos_i = pos_ref[...]            # (TI, 3) f32
    xi = pos_i[:, 0:1]
    yi = pos_i[:, 1:2]
    zi = pos_i[:, 2:3]
    bcol = bcol_ref[...]            # (TI, 1) int32
    tri = tri_ref[...]              # (chunk, chunk) bf16, resident constant

    row_ids = i * tile_i + lax.broadcasted_iota(jnp.int32, (tile_i, 1), 0)

    # f32 carry is exact up to 2^24 neighbors per row (far beyond any real K).
    count = cnt_ref[...]            # (TI, 1)
    kmax = float(max_num_neighbors)

    # max_num_neighbors: keep the first K candidates per row (by column index).
    # TODO(synk): torch_cluster's neighbor-drop order under max_num_neighbors
    # is implementation-defined; here it is "lowest node index first".
    for c in range(tile_j // chunk):
        c0 = c * chunk
        pj = post_ref[:, c0:c0 + chunk]                 # (3, chunk)
        dx = xi - pj[0:1, :]
        dy = yi - pj[1:2, :]
        dz = zi - pj[2:3, :]
        d = jnp.sqrt(dx * dx + dy * dy + dz * dz)       # (TI, chunk)

        same = bcol == brow_ref[:, c0:c0 + chunk]       # (TI, chunk)
        cand = jnp.logical_and(same, d <= cutoff_upper)

        col_ids = (j * tile_j + c0) + lax.broadcasted_iota(
            jnp.int32, (1, chunk), 1)
        diag = row_ids == col_ids                       # (TI, chunk)
        if loop:
            w = jnp.where(diag, 0.0, d)                 # self-loop weight 0
        else:
            cand = jnp.logical_and(cand, jnp.logical_not(diag))
            w = d

        # Inclusive prefix count of candidates along the row via a small
        # bf16 upper-triangular MXU matmul (exact: 0/1 values, sums <= chunk).
        cand_b = cand.astype(jnp.bfloat16)
        running = count + jnp.dot(cand_b, tri,
                                  preferred_element_type=jnp.float32)
        keep = jnp.logical_and(cand, running <= kmax)
        if cutoff_lower > 0.0:
            keep = jnp.logical_and(keep, w >= cutoff_lower)

        # Sentinel-masked f32 output (-1.0 = no edge); lane-dense stores.
        w_ref[:, c0:c0 + chunk] = jnp.where(keep, w, -1.0)

        # Last lane of the inclusive prefix already equals carry + chunk total.
        count = running[:, chunk - 1:chunk]
    cnt_ref[...] = count


def _round_up(x, m):
    return ((x + m - 1) // m) * m


def distance_pallas(pos, batch, *, cutoff_lower, cutoff_upper,
                    max_num_neighbors=32, return_vecs=False, loop=False,
                    tile_i=256, tile_j=1024):
    """Pallas equivalent of muben/torchmdnet Distance.forward."""
    pos = jnp.asarray(pos, jnp.float32)
    batch = jnp.asarray(batch, jnp.int32)
    n = pos.shape[0]

    # Tile selection: row tile a multiple of 8, column tile a multiple of 128.
    ti = max(8, min(_round_up(tile_i, 8), _round_up(n, 8)))
    # Keep >= 2 row tiles so the "parallel" row axis shards across both
    # TensorCores on v7x.
    if _round_up(n, ti) // ti < 2 and n > 8:
        ti = max(8, min(ti, _round_up(-(-n // 2), 8)))
    tj = max(_LANE, min(_round_up(tile_j, _LANE), _round_up(n, _LANE)))

    # Decoupled padding: at most one extra tile of waste per axis.
    rows_pad = _round_up(n, ti)
    cols_pad = _round_up(n, tj)

    pos_rows = jnp.zeros((rows_pad, 3), jnp.float32).at[:n].set(pos)
    pos_cols = jnp.zeros((cols_pad, 3), jnp.float32).at[:n].set(pos)
    pos_t = pos_cols.T                                   # (3, cols_pad)
    bcol = jnp.full((rows_pad, 1), -1, jnp.int32).at[:n, 0].set(batch)
    brow = jnp.full((1, cols_pad), -1, jnp.int32).at[0, :n].set(batch)

    # Prefix-count chunk: match the 256x256 MXU when tj allows it.
    chunk = 256 if tj % 256 == 0 else _LANE
    tri_host = (np.arange(chunk)[:, None] <= np.arange(chunk)[None, :])
    tri = jnp.asarray(tri_host, jnp.bfloat16)            # (chunk, chunk)

    kernel = functools.partial(
        _distance_kernel,
        tile_i=ti, tile_j=tj, chunk=chunk,
        cutoff_lower=float(cutoff_lower), cutoff_upper=float(cutoff_upper),
        max_num_neighbors=int(max_num_neighbors), loop=bool(loop))

    grid = (rows_pad // ti, cols_pad // tj)
    w = pl.pallas_call(
        kernel,
        out_shape=jax.ShapeDtypeStruct((rows_pad, cols_pad), jnp.float32),
        grid=grid,
        in_specs=[
            pl.BlockSpec((chunk, chunk), lambda i, j: (0, 0)),  # tri, resident
            pl.BlockSpec((ti, 3), lambda i, j: (i, 0)),
            pl.BlockSpec((3, tj), lambda i, j: (0, j)),
            pl.BlockSpec((ti, 1), lambda i, j: (i, 0)),
            pl.BlockSpec((1, tj), lambda i, j: (0, j)),
        ],
        out_specs=pl.BlockSpec((ti, tj), lambda i, j: (i, j)),
        scratch_shapes=[pltpu.VMEM((ti, 1), jnp.float32)],
        compiler_params=pltpu.CompilerParams(
            # Column axis MUST stay "arbitrary" (sequential) for the cnt carry.
            dimension_semantics=("parallel", "arbitrary"),
            vmem_limit_bytes=32 * 1024 * 1024),
    )(tri, pos_rows, pos_t, bcol, brow)

    # Device-side slice removes the padding before the host transfer.
    w = w[:n, :n]

    # --- host-side glue: sentinel-masked dense matrix -> variable-length edge list ---
    w_np = np.asarray(jax.device_get(w))
    rows, cols = np.nonzero(w_np >= 0.0)
    edge_index = jnp.asarray(np.stack([rows, cols]), jnp.int32)   # (2, E)
    edge_weight = jnp.asarray(w_np[rows, cols], jnp.float32)      # (E,)
    edge_vec = None
    if return_vecs:
        edge_vec = pos[edge_index[0]] - pos[edge_index[1]]        # (E, 3)
    return edge_index, edge_weight, edge_vec


def _numpy_reference(pos, batch, cutoff_lower, cutoff_upper, max_num_neighbors, loop):
    pos = np.asarray(pos, np.float64)
    batch = np.asarray(batch)
    diff = pos[:, None, :] - pos[None, :, :]
    d = np.sqrt((diff ** 2).sum(-1))
    same = batch[:, None] == batch[None, :]
    cand = same & (d <= cutoff_upper)
    if not loop:
        np.fill_diagonal(cand, False)
    cum = np.cumsum(cand.astype(np.int64), axis=1)
    keep = cand & (cum <= max_num_neighbors)
    w = d.copy()
    if loop:
        np.fill_diagonal(w, 0.0)
    keep = keep & (w >= cutoff_lower)
    rows, cols = np.nonzero(keep)
    return np.stack([rows, cols]), w[rows, cols]


def _pairwise_np(pos):
    p = np.asarray(pos, np.float64)
    diff = p[:, None, :] - p[None, :, :]
    return np.sqrt((diff ** 2).sum(-1)).ravel()


def _safe_cutoff(d_vals, nominal, margin=1e-3):
    # Nudge the cutoff so no pairwise distance sits on the f32/f64 boundary.
    c = float(nominal)
    while np.any(np.abs(d_vals - c) < margin):
        c += 2.0 * margin
    return c


if __name__ == "__main__":
    key = jax.random.PRNGKey(0)
    k1, k2 = jax.random.split(key)

    def check(pos, batch, cutoff_lower, cutoff_upper, max_nb, loop, **tile_kw):
        ei, ew, ev = distance_pallas(
            pos, batch, cutoff_lower=cutoff_lower, cutoff_upper=cutoff_upper,
            max_num_neighbors=max_nb, return_vecs=True, loop=loop, **tile_kw)
        jax.block_until_ready(ew)
        ref_idx, ref_w = _numpy_reference(
            np.asarray(pos), np.asarray(batch),
            cutoff_lower, cutoff_upper, max_nb, loop)
        assert np.array_equal(np.asarray(ei), ref_idx), "edge_index mismatch"
        assert np.allclose(np.asarray(ew), ref_w, atol=1e-4), "edge_weight mismatch"
        assert ev.shape == (ei.shape[1], 3)

    # Case 1: two molecules of 8 atoms, no self loops.
    pos1 = jax.random.normal(k1, (16, 3), jnp.float32) * 2.0
    batch1 = jnp.array([0] * 8 + [1] * 8, dtype=jnp.int32)
    d1 = _pairwise_np(pos1)
    cu1 = _safe_cutoff(d1, 5.0)
    cl1 = _safe_cutoff(d1, 0.5)
    check(pos1, batch1, cl1, cu1, 32, False)

    # Case 2: self loops included (zero-weight self edges, zero lower cutoff).
    check(pos1, batch1, 0.0, cu1, 32, True)

    # Case 3: larger molecule, binding neighbor cap, multiple column tiles
    # (exercises the carried per-row count across the j grid axis).
    pos2 = jax.random.normal(k2, (200, 3), jnp.float32) * 2.0
    batch2 = jnp.zeros((200,), dtype=jnp.int32)
    d2 = _pairwise_np(pos2)
    cu2 = _safe_cutoff(d2, 5.0)
    cl2 = _safe_cutoff(d2, 0.5)
    check(pos2, batch2, cl2, cu2, 4, False, tile_i=16, tile_j=128)

    # Case 4: default tiles on a non-tile-aligned N (decoupled padding path,
    # 2 row tiles for megacore, 256-lane prefix chunks suppressed since tj=256).
    check(pos2, batch2, cl2, cu2, 8, False)

    print("KERNEL_OK")
</pallas_src>

<mosaic_0001>
module attributes {stable_mosaic.version = 11 : i64} {
  func.func @_distance_kernel(%arg0: i32, %arg1: i32, %arg2: memref<128x128xbf16, #tpu.memory_space<vmem>>, %arg3: memref<8x3xf32, #tpu.memory_space<vmem>>, %arg4: memref<3x128xf32, #tpu.memory_space<vmem>>, %arg5: memref<8x1xi32, #tpu.memory_space<vmem>>, %arg6: memref<1x128xi32, #tpu.memory_space<vmem>>, %arg7: memref<8x128xf32, #tpu.memory_space<vmem>>, %arg8: memref<8x1xf32, #tpu.memory_space<vmem>>) attributes {dimension_semantics = [#tpu.dimension_semantics<parallel>, #tpu.dimension_semantics<arbitrary>], iteration_bounds = array<i64: 2, 1>, scalar_prefetch = 0 : i64, scratch_operands = 1 : i64, tpu.core_type = #tpu.core_type<tc>, window_params = [{pipeline_mode = #tpu.pipeline_mode<synchronous>, transform_indices = @transform_0, window_bounds = array<i64: 128, 128>}, {transform_indices = @transform_1, window_bounds = array<i64: 8, 3>}, {transform_indices = @transform_2, window_bounds = array<i64: 3, 128>}, {transform_indices = @transform_3, window_bounds = array<i64: 8, 1>}, {transform_indices = @transform_4, window_bounds = array<i64: 1, 128>}, {transform_indices = @transform_5, window_bounds = array<i64: 8, 128>}]} {
    %c0_i32 = arith.constant 0 : i32
    %0 = arith.cmpi eq, %arg1, %c0_i32 : i32
    %1 = arith.extui %0 : i1 to i32
    %c0_i32_0 = arith.constant 0 : i32
    %2 = arith.cmpi ne, %1, %c0_i32_0 : i32
    scf.if %2 {
      %cst_22 = arith.constant 0.000000e+00 : f32
      %67 = vector.broadcast %cst_22 : f32 to vector<8x1xf32>
      %c0_23 = arith.constant 0 : index
      %c0_24 = arith.constant 0 : index
      %68 = vector.load %arg8[%c0_23, %c0_24] : memref<8x1xf32, #tpu.memory_space<vmem>>, vector<8x1xf32>
      tpu.vector_store %arg8[%c0_23, %c0_24], %67 {strides = array<i32>} : memref<8x1xf32, #tpu.memory_space<vmem>>, vector<8x1xf32>,
    } else {
    }
    %c0 = arith.constant 0 : index
    %c0_1 = arith.constant 0 : index
    %3 = vector.load %arg3[%c0, %c0_1] : memref<8x3xf32, #tpu.memory_space<vmem>>, vector<8x3xf32>
    %4 = vector.extract_strided_slice %3 {offsets = [0, 0], sizes = [8, 1], strides = [1, 1]} : vector<8x3xf32> to vector<8x1xf32>
    %5 = vector.extract_strided_slice %3 {offsets = [0, 1], sizes = [8, 1], strides = [1, 1]} : vector<8x3xf32> to vector<8x1xf32>
    %6 = vector.extract_strided_slice %3 {offsets = [0, 2], sizes = [8, 1], strides = [1, 1]} : vector<8x3xf32> to vector<8x1xf32>
    %c0_2 = arith.constant 0 : index
    %c0_3 = arith.constant 0 : index
    %7 = vector.load %arg5[%c0_2, %c0_3] : memref<8x1xi32, #tpu.memory_space<vmem>>, vector<8x1xi32>
    %c0_4 = arith.constant 0 : index
    %c0_5 = arith.constant 0 : index
    %8 = vector.load %arg2[%c0_4, %c0_5] : memref<128x128xbf16, #tpu.memory_space<vmem>>, vector<128x128xbf16>
    %c8_i32 = arith.constant 8 : i32
    %9 = arith.muli %arg0, %c8_i32 : i32
    %10 = tpu.iota {dimensions = array<i32: 0>} : vector<8x1xi32>
    %11 = vector.broadcast %9 : i32 to vector<8x1xi32>
    %12 = arith.addi %11, %10 : vector<8x1xi32>
    %c0_6 = arith.constant 0 : index
    %c0_7 = arith.constant 0 : index
    %13 = vector.load %arg8[%c0_6, %c0_7] : memref<8x1xf32, #tpu.memory_space<vmem>>, vector<8x1xf32>
    %c0_8 = arith.constant 0 : index
    %c0_9 = arith.constant 0 : index
    %14 = vector.load %arg4[%c0_8, %c0_9] : memref<3x128xf32, #tpu.memory_space<vmem>>, vector<3x128xf32>
    %15 = vector.extract_strided_slice %14 {offsets = [0, 0], sizes = [1, 128], strides = [1, 1]} : vector<3x128xf32> to vector<1x128xf32>
    %16 = vector.broadcast %4 : vector<8x1xf32> to vector<8x128xf32>
    %17 = vector.broadcast %15 : vector<1x128xf32> to vector<8x128xf32>
    %18 = arith.subf %16, %17 : vector<8x128xf32>
    %19 = vector.extract_strided_slice %14 {offsets = [1, 0], sizes = [1, 128], strides = [1, 1]} : vector<3x128xf32> to vector<1x128xf32>
    %20 = vector.broadcast %5 : vector<8x1xf32> to vector<8x128xf32>
    %21 = vector.broadcast %19 : vector<1x128xf32> to vector<8x128xf32>
    %22 = arith.subf %20, %21 : vector<8x128xf32>
    %23 = vector.extract_strided_slice %14 {offsets = [2, 0], sizes = [1, 128], strides = [1, 1]} : vector<3x128xf32> to vector<1x128xf32>
    %24 = vector.broadcast %6 : vector<8x1xf32> to vector<8x128xf32>
    %25 = vector.broadcast %23 : vector<1x128xf32> to vector<8x128xf32>
    %26 = arith.subf %24, %25 : vector<8x128xf32>
    %27 = arith.mulf %18, %18 : vector<8x128xf32>
    %28 = arith.mulf %22, %22 : vector<8x128xf32>
    %29 = arith.addf %27, %28 : vector<8x128xf32>
    %30 = arith.mulf %26, %26 : vector<8x128xf32>
    %31 = arith.addf %29, %30 : vector<8x128xf32>
    %32 = math.sqrt %31 : vector<8x128xf32>
    %c0_10 = arith.constant 0 : index
    %c0_11 = arith.constant 0 : index
    %33 = vector.load %arg6[%c0_10, %c0_11] : memref<1x128xi32, #tpu.memory_space<vmem>>, vector<1x128xi32>
    %34 = vector.broadcast %7 : vector<8x1xi32> to vector<8x128xi32>
    %35 = vector.broadcast %33 : vector<1x128xi32> to vector<8x128xi32>
    %36 = arith.cmpi eq, %34, %35 : vector<8x128xi32>
    %cst = arith.constant 5.000000e+00 : f32
    %37 = vector.broadcast %cst : f32 to vector<8x128xf32>
    %38 = arith.cmpf ole, %32, %37 : vector<8x128xf32>
    %39 = arith.andi %36, %38 : vector<8x128xi1>
    %c128_i32 = arith.constant 128 : i32
    %40 = arith.muli %arg1, %c128_i32 : i32
    %c0_i32_12 = arith.constant 0 : i32
    %41 = arith.addi %40, %c0_i32_12 : i32
    %42 = tpu.iota {dimensions = array<i32: 1>} : vector<1x128xi32>
    %43 = vector.broadcast %41 : i32 to vector<1x128xi32>
    %44 = arith.addi %43, %42 : vector<1x128xi32>
    %45 = vector.broadcast %12 : vector<8x1xi32> to vector<8x128xi32>
    %46 = vector.broadcast %44 : vector<1x128xi32> to vector<8x128xi32>
    %47 = arith.cmpi eq, %45, %46 : vector<8x128xi32>
    %cst_13 = arith.constant dense<true> : vector<8x128xi1>
    %48 = arith.xori %47, %cst_13 : vector<8x128xi1>
    %49 = arith.andi %39, %48 : vector<8x128xi1>
    %50 = arith.extui %49 : vector<8x128xi1> to vector<8x128xi32>
    %51 = arith.sitofp %50 : vector<8x128xi32> to vector<8x128xf32>
    %52 = arith.truncf %51 : vector<8x128xf32> to vector<8x128xbf16>
    %cst_14 = arith.constant dense<0.000000e+00> : vector<8x128xf32>
    %53 = tpu.matmul %52, %8, %cst_14 {dimension_numbers = #tpu.dot_dimension_numbers<[1], [0], [0], [1], [0, 0, 1, 1], [], []>} : vector<8x128xbf16>, vector<128x128xbf16>, vector<8x128xf32> -> vector<8x128xf32>
    %54 = vector.broadcast %13 : vector<8x1xf32> to vector<8x128xf32>
    %55 = arith.addf %54, %53 : vector<8x128xf32>
    %cst_15 = arith.constant 3.200000e+01 : f32
    %56 = vector.broadcast %cst_15 : f32 to vector<8x128xf32>
    %57 = arith.cmpf ole, %55, %56 : vector<8x128xf32>
    %58 = arith.andi %49, %57 : vector<8x128xi1>
    %cst_16 = arith.constant 5.000000e-01 : f32
    %59 = vector.broadcast %cst_16 : f32 to vector<8x128xf32>
    %60 = arith.cmpf oge, %32, %59 : vector<8x128xf32>
    %61 = arith.andi %58, %60 : vector<8x128xi1>
    %cst_17 = arith.constant -1.000000e+00 : f32
    %62 = vector.broadcast %cst_17 : f32 to vector<8x128xf32>
    %63 = arith.select %61, %32, %62 : vector<8x128xi1>, vector<8x128xf32>
    %c0_18 = arith.constant 0 : index
    %c0_19 = arith.constant 0 : index
    %64 = vector.load %arg7[%c0_18, %c0_19] : memref<8x128xf32, #tpu.memory_space<vmem>>, vector<8x128xf32>
    tpu.vector_store %arg7[%c0_18, %c0_19], %63 {strides = array<i32>} : memref<8x128xf32, #tpu.memory_space<vmem>>, vector<8x128xf32>,
    %65 = vector.extract_strided_slice %55 {offsets = [0, 127], sizes = [8, 1], strides = [1, 1]} : vector<8x128xf32> to vector<8x1xf32>
    %c0_20 = arith.constant 0 : index
    %c0_21 = arith.constant 0 : index
    %66 = vector.load %arg8[%c0_20, %c0_21] : memref<8x1xf32, #tpu.memory_space<vmem>>, vector<8x1xf32>
    tpu.vector_store %arg8[%c0_20, %c0_21], %65 {strides = array<i32>} : memref<8x1xf32, #tpu.memory_space<vmem>>, vector<8x1xf32>,
    return
  }
  func.func @transform_0(%arg0: i32, %arg1: i32) -> (i32, i32) {
    %c0_i32 = arith.constant 0 : i32
    %c0_i32_0 = arith.constant 0 : i32
    %c0_i32_1 = arith.constant 0 : i32
    return %c0_i32, %c0_i32_0 : i32, i32
  }
  func.func @transform_1(%arg0: i32, %arg1: i32) -> (i32, i32) {
    %c0_i32 = arith.constant 0 : i32
    %c0_i32_0 = arith.constant 0 : i32
    return %arg0, %c0_i32 : i32, i32
  }
  func.func @transform_2(%arg0: i32, %arg1: i32) -> (i32, i32) {
    %c0_i32 = arith.constant 0 : i32
    %c0_i32_0 = arith.constant 0 : i32
    return %c0_i32, %arg1 : i32, i32
  }
  func.func @transform_3(%arg0: i32, %arg1: i32) -> (i32, i32) {
    %c0_i32 = arith.constant 0 : i32
    %c0_i32_0 = arith.constant 0 : i32
    return %arg0, %c0_i32 : i32, i32
  }
  func.func @transform_4(%arg0: i32, %arg1: i32) -> (i32, i32) {
    %c0_i32 = arith.constant 0 : i32
    %c0_i32_0 = arith.constant 0 : i32
    return %c0_i32, %arg1 : i32, i32
  }
  func.func @transform_5(%arg0: i32, %arg1: i32) -> (i32, i32) {
    %c0_i32 = arith.constant 0 : i32
    return %arg0, %arg1 : i32, i32
  }
}

</mosaic_0001>

<bundles_post_ra>
// kernel: tpu_custom_call.1
= control target key start
LH: loop header
LB: loop body
LE: loop exit
PB: predicated region body
PF: predicated region fallthrough
CT: control target
= control target key end

     0   :  { %10 = vsyncpa [#allocation4], 0  ;;  %s1022_s0 = inlined_call_operand.hbm [shape: bf16[128,128], index: 0, kind: input, shape index: {}]   ;;  %s1023_s1 = inlined_call_operand.vmem [shape: f32[16,3], index: 1, kind: input, shape index: {}]   ;;  %s1024_s2 = inlined_call_operand.vmem [shape: f32[3,128], index: 2, kind: input, shape index: {}]   ;;  %s1025_s3 = inlined_call_operand.vmem [shape: s32[16,1], index: 3, kind: input, shape index: {}]   ;;  %s1026_s4 = inlined_call_operand.vmem [shape: s32[1,128], index: 4, kind: input, shape index: {}]   ;;  %s1027_s5 = inlined_call_operand.hbm [shape: f32[16,128], index: 5, kind: output, shape index: {}]  }
   0x1   :  { %11 = vsyncpa [#allocation5], 0 }
   0x2   :  { %13 = vsyncpa [#allocation5 + $0x1], 0  ;;  %s898_s18 = smov 0   ;;  %s900_s19 = smov 0  }
   0x3   :  { %s902_s20 = smov 0   ;;  %s904_s21 = smov 0  }
   0x4   :  { %s906_s22 = smov 0   ;;  %s908_s23 = smov 0  }
   0x5 LB: > { %s600_s24 = sadd.s32 4294967295, %s856_s23   ;;  %s601_s25 = sadd.s32 4294967294, %s856_s23   ;;  %s856_s23 = sphi %s908_s23, %s19_s23   ;;  %s852_s22 = sphi %s906_s22, %s1036_s22   ;;  %s848_s21 = sphi %s904_s21, %s1035_s21   ;;  %s844_s20 = sphi %s902_s20, %s1034_s20   ;;  %s840_s19 = sphi %s900_s19, %s1033_s19   ;;  %s836_s18 = sphi %s898_s18, %s1032_s18  }
   0x6   : > { %s31_s26 = sadd.s32 1, %s852_s22  ;;  %s165_s27 = sadd.s32 1, %s844_s20 }
   0x7   : > { %p33_p0 = scmp.ge.s32.totalorder %s31_s26, 2  ;;  %p175_p1 = scmp.ne.s32.totalorder %s844_s20, %s840_s19 }
   0x8   : > { %p176_p2 = scmp.eq.s32.totalorder %s600_s24, 1  ;;  %p181_p3 = scmp.ne.s32.totalorder %s840_s19, %s836_s18 }
   0x9   : > { %s1038_s26 = smov (%p33_p0, %s31_s26), 0  ;;  %p182_p5 = scmp.eq.s32.totalorder %s601_s25, 1 }
   0xa   : > { %p938_p4 = por %p176_p2, %p175_p1  ;;  %s160_s29 = ssub.s32 %s852_s22, %s1038_s26 }
   0xb   : > { %p602_p6 = scmp.ge.s32.totalorder %s856_s23, 1  ;;  %p163_p7 = scmp.eq.s32.totalorder %s160_s29, 0 }
   0xc   : > { %p945_p8 = por %p182_p5, %p181_p3  ;;  %p189_p9 = scmp.lt.s32.totalorder %s856_s23, 3 }
   0xd   : > { %s951_s6 = scalar_select %p163_p7, %s844_s20, %s165_s27  }
   0xe   : > { %p190_p10 = pnand %p602_p6, %p189_p9  ;;  %p674_p11 = scmp.eq.s32.totalorder %s600_s24, 0 }
   0xf   : > { %s200_s9 = sshll.u32 %s1022_s0, 4  ;;  %s858_s10 = smov [#allocation3]   ;;  %s201_s9 = int_to_ptr.hbm [resolvable:$true] %s200_s9 }
  0x10   : > { %p666_p12 = pneg %p190_p10  ;;  %s202_s11 = sshll.u32 %s858_s10, 4  ;;  %s203_s11 = int_to_ptr.vmem [resolvable:$true] %s202_s11 }
  0x11   : > { %s859_s12 = smov 64   ;;  %s860_s13 = smov 4  }
  0x12   : > { %p667_p13 = pnand %p674_p11, %p666_p12  ;;  %245 = sbr.rel (%p190_p10) target bundleno = 408 (0x198), region = 40 }
  0x14   : > { %669 = dma.hbm_to_vmem [thread:$0]  (!%p667_p13), %s201_s9, 1024, %s203_s11, [#allocation4], %s859_s12, %s859_s12, %s860_s13  }
  0x17   : > { %827 = dma.done.wait (%p674_p11), [#allocation4], 1024  }
  0x18   : > { %829 = vsyncadd (%p674_p11), [#allocation4], 4294966272  ;;  %p284_p0 = scmp.lt.s32.totalorder %s848_s21, 1  ;;  %v861_v0 = vmov 0   ;;  %v862_v1 = vmov 2   ;;  %v863_v4 = vmov 1   ;;  %v324_v30 = vlaneseq }
  0x19   : > { %735 = vset.pattern.permute.xlu0 %v861_v0  ;;  %737 = vset.pattern.permute.xlu1 %v862_v1  ;;  %v659_v5 = vld [vmem:[#allocation3 + $0x38] sm:$0xff]  ;;  %v658_v6 = vld [vmem:[#allocation3 + $0x30] sm:$0xff]  ;;  %v657_v7 = vld [vmem:[#allocation3 + $0x28] sm:$0xff]  ;;  %vm303_vm0 = vcmask 7168   ;;  %v864_v26 = vmov 0.0   ;;  %s612_s9 = sshll.u32 %s848_s21, 3 }
  0x1a   : > { %s285_s14 = scalar_select %p284_p0, %s848_s21, 1  ;;  %739 = vset.pattern.permute.xlu2 %v861_v0  ;;  %433 = vmatpush.bf16.msra.mxu0 %v659_v5  ;;  %v656_v8 = vld [vmem:[#allocation3 + $0x20] sm:$0xff]  ;;  %v655_v9 = vld [vmem:[#allocation3 + $0x18] sm:$0xff]  ;;  %v654_v10 = vld [vmem:[#allocation3 + $0x10] sm:$0xff]  ;;  %304 = vst.msk [vmem:[#allocation2] sm:$0xff] %vm303_vm0, %v864_v26  ;;  %v325_v33 = vshrl.u32 %v324_v30, 7  ;;  %v326_v35 = vstv %s612_s9 }
  0x1b   : > { %v653_v12 = vld [vmem:[#allocation3 + $0x8] sm:$0xff]  ;;  %v329_v13 = vld [vmem:[%s1024_s2] sm:$0x7]  ;;  %v652_v18 = vld [vmem:[#allocation3] sm:$0xff]  ;;  %v376_v38 = vand.u32 127, %v324_v30  ;;  %vm865_vm5 = vmmov 1   ;;  %s476_s16 = scalar_lea.hbm %s1027_s5, %s612_s9 }
  0x1c   : > { %s610_s15 = sshll.u32 %s285_s14, 3  ;;  %v335_v14 = vperm.slane %v329_v13, 0  ;;  %v347_v15 = vperm.slane %v329_v13, 2  ;;  %v341_v17 = vperm.slane %v329_v13, 1  ;;  %v327_v37 = vadd.s32 %v326_v35, %v325_v33  ;;  %v741_v40 = vld [vmem:[%s1026_s4] ss:$0 sm:$0xff] }
  0x1d   : > { %s287_s24 = scalar_lea.vmem %s1023_s1, %s610_s15  ;;  %s295_s29 = scalar_lea.vmem %s1025_s3, %s610_s15  ;;  %v866_v48 = vmov 1.0|1.0  }
  0x1e   : > { %v305_v2 = vld [vmem:[%s287_s24] sm:$0xff]  ;;  %434 = vmatpush.bf16.msra.mxu0 %v658_v6  ;;  %vm379_vm1 = vcmp.eq.s32.totalorder %v327_v37, %v376_v38  ;;  %s281_s12 = sand.u32 1, %s840_s19   ;;  %s480_s25 = sshll.u32 %s476_s16, 4  ;;  %s481_s25 = int_to_ptr.hbm [resolvable:$true] %s480_s25 }
  0x1f   : > { %332 = vperm.xlu0 %735, %v305_v2   ;;  %344 = vperm.xlu1 %737, %v305_v2   ;;  %v306_v3 = vld [vmem:[%s295_s29] sm:$0xff]  ;;  %vm380_vm6 = vmxor %vm379_vm1, %vm865_vm5  ;;  %s609_s13 = sshll.u32 %s281_s12, 3  ;;  %s867_s27 = smov 1  }
  0x20   : > { %s283_s17 = scalar_lea.vmem [#allocation6], %s609_s13  ;;  %s465_s21 = scalar_lea.sflag [#allocation5], %s281_s12 }
  0x21   : > { %v328_v29 = vld [vmem:[#allocation2] sm:$0xff]  ;;  %s478_s24 = sshll.u32 %s283_s17, 4  ;;  %s788_s29 = sshra.s32 %s481_s25, 4  ;;  %s479_s24 = int_to_ptr.vmem [resolvable:$true] %s478_s24  ;;  %s789_s29 = int_to_ptr.hbm [resolvable:$true] %s788_s29 }
  0x22   : > { %435 = vmatpush.bf16.msra.mxu0 %v657_v7  ;;  %448 = vperm.xlu2 %739, %v328_v29   ;;  %s790_s7 = scalar_lea.hbm %s789_s29, 8  ;;  %s794_s10 = scalar_lea.hbm %s1027_s5, 16 }
  0x23   : > { %p791_p1 = scmp.ne.s32.totalorder %s789_s29, %s790_s7  ;;  %p795_p5 = scmp.lt.s32.totalorder %s789_s29, %s1027_s5 }
  0x24   : > { %p796_p6 = scmp.lt.s32.totalorder %s794_s10, %s790_s7 }
  0x25   : > { %p792_p2 = pnand %p791_p1, %p938_p4 }
  0x26   : > { %436 = vmatpush.bf16.msra.mxu0 %v656_v8  ;;  %p797_p7 = por %p796_p6, %p795_p5 }
  0x27   : > { %736 = vset.pattern.permute.xlu0 %v863_v4  ;;  %738 = vset.pattern.permute.xlu1 %v861_v0  ;;  %p793_p3 = pneg %p792_p2 }
  0x28   : > { %338 = vperm.xlu0 %736, %v305_v2   ;;  %368 = vperm.xlu1 %738, %v306_v3  }
  0x29   : > { %p798_p9 = pnand %p797_p7, %p793_p3 }
  0x2a   : > { %437 = vmatpush.bf16.msra.mxu0 %v655_v9 }
  0x2e   : > { %438 = vmatpush.bf16.msra.mxu0 %v654_v10 }
  0x30   : > { %740 = vset.pattern.permute.xlu0 %v861_v0 }
  0x32   : > { %439 = vmatpush.bf16.msra.mxu0 %v653_v12 }
  0x36   : > { %440 = vmatpush.bf16.msra.mxu0 %v652_v18 }
  0x7c   : > { %v449_v49 = vpop.permute.xlu2 %448 }
  0x91   : > { %v333_v11 = vpop.permute.xlu0 %332  ;;  %v345_v16 = vpop.permute.xlu1 %344 }
  0x92   : > { %v336_v19 = vsub.f32 %v333_v11, %v335_v14  ;;  %v348_v20 = vsub.f32 %v345_v16, %v347_v15 }
  0x94   : > { %v349_v23 = vmul.f32 %v336_v19, %v336_v19  ;;  %v352_v25 = vmul.f32 %v348_v20, %v348_v20 }
  0x9a   : > { %v339_v21 = vpop.permute.xlu0 %338  ;;  %v369_v42 = vpop.permute.xlu1 %368 }
  0x9b   : > { %v342_v22 = vsub.f32 %v339_v21, %v341_v17  ;;  %vm371_vm4 = vcmp.eq.s32.totalorder %v369_v42, %v741_v40 }
  0x9d   : > { %v350_v24 = vmul.f32 %v342_v22, %v342_v22 }
  0x9f   : > { %v351_v27 = vadd.f32 %v350_v24, %v349_v23 }
  0xa1   : > { %v353_v28 = vadd.f32 %v352_v25, %v351_v27 }
  0xa3   : > { %742 = vrsqrt.f32 %v353_v28  ;;  %vm361_vm2 = vcmp.eq.f32.partialorder %v353_v28, inf  ;;  %v364_v44 = vand.u32 2147483648, %v353_v28  ;;  %vm363_vm3 = vcmp.eq.f32.partialorder %v353_v28, 0.0 }
  0xa9   : > { %v743_v31 = vpop.eup %742 }
  0xaa   : > { %v355_v32 = vmul.f32 %v743_v31, %v353_v28 }
  0xac   : > { %v356_v34 = vmul.f32 %v743_v31, %v355_v32 }
  0xae   : > { %v357_v36 = vmul.f32 0.5, %v356_v34 }
  0xb0   : > { %v358_v39 = vsub.f32 1.5, %v357_v36 }
  0xb2   : > { %v359_v41 = vmul.f32 %v743_v31, %v358_v39 }
  0xb4   : > { %v360_v43 = vmul.f32 %v359_v41, %v353_v28 }
  0xb6   : > { %v362_v45 = vsel %vm361_vm2, %v353_v28, %v360_v43 }
  0xb7   : > { %v365_v46 = vsel %vm363_vm3, %v364_v44, %v362_v45 }
  0xb8   : > { %vm372_vm7 = vcmp.le.f32.partialorder %v365_v46, 5.0  ;;  %vm454_vm12 = vcmp.ge.f32.partialorder %v365_v46, 0.5 }
  0xb9   : > { %vm373_vm8 = vmand %vm371_vm4, %vm372_vm7 }
  0xba   : > { %vm974_vm9 = vmand %vm373_vm8, %vm380_vm6 }
  0xbb   : > { %vm646_vm10 = vmpackc.low %vm974_vm9, %vm974_vm9 }
  0xbc   : > { %647 = vmatmul.msk.bf16.vlgmr.msra.gmra.mxu0 %vm646_vm10, %v866_v48 }
 0x139   : > { %v442_v50 = vpop.f32.mrf.mxu0 }
 0x13a   : > { %v451_v51 = vadd.f32 %v449_v49, %v442_v50 }
 0x13c   : > { %vm452_vm11 = vcmp.le.f32.partialorder %v451_v51, 32.0  ;;  %459 = vrot.lane.b32.xlu2 %v451_v51, %s867_s27 }
 0x13d   : > { %vm453_vm13 = vmand %vm974_vm9, %vm452_vm11 }
 0x13e   : > { %vm455_vm14 = vmand %vm453_vm13, %vm454_vm12 }
 0x13f   : > { %v456_v52 = vsel %vm455_vm14, %v365_v46, -1.0 }
 0x140   : > { %457 = vst [vmem:[%s283_s17] sm:$0xff] %v456_v52 }
 0x141   : > { %v444_v53 = vpop.f32.mrf.mxu0 }
 0x142   : > { %801 = shalt.err (!%p798_p9)
}
 0x143   : > { %664 = dma.vmem_to_hbm [thread:$0]  (%p938_p4), %s479_s24, 128, %s481_s25, %s465_s21  }
 0x196   : > { %v460_v54 = vpop.permute.xlu2 %459 }
 0x197   : > { %463 = vst.msk [vmem:[#allocation2] sm:$0xff] %vm303_vm0, %v460_v54 }
 0x198 PF: > { %p676_p10 = scmp.ge.s32.totalorder %s856_s23, 2  ;;  %s492_s12 = sand.u32 1, %s836_s18  }
 0x199   : > { %s493_s14 = scalar_lea.sflag [#allocation5], %s492_s12 }
 0x19a   : > { %p671_p11 = pnand %p676_p10, %p945_p8 }
 0x19c   : > { %p672_p12 = pneg %p671_p11 }
 0x19e   : > { %831 = dma.done.wait (%p672_p12), %s493_s14, 128  }
 0x19f   : > { %833 = vsyncadd (%p672_p12), %s493_s14, 4294967168  ;;  %s19_s23 = sadd.s32 1, %s856_s23   ;;  %s1032_s18 = smov %s840_s19 }
 0x1a0   : > { %p16_p13 = scmp.ge.s32.totalorder %s19_s23, 4   ;;  %s1033_s19 = smov %s844_s20 }
 0x1a1   : > { %s1034_s20 = smov %s951_s6  ;;  %s1035_s21 = smov %s852_s22 }
 0x1a2   : > { %s1036_s22 = smov %s1038_s26  ;;  %18 = sbr.rel (!%p16_p13) target bundleno = 5 (0x5), region = 93 }
 0x1a7   :  { %499 = vsyncpa [#allocation4], 1 }
 0x1a8   :  { %501 = vsyncpa [#allocation4 + $0x1], 1 }
 0x1a9   :  { %502 = vsyncpa [#allocation5], 1 }
 0x1aa   :  { %504 = vsyncpa [#allocation5 + $0x1], 1 }

</bundles_post_ra>
